<compile_context>
chip_gen: v5e
topology: v5e:2x2
jax: 0.10.0
libtpu: 0.0.40
codegen_flags: <defaults>
</compile_context>

<pallas_src>
import numpy as np
import jax
import jax.numpy as jnp
from jax.experimental import pallas as pl
from jax.experimental.pallas import tpu as pltpu


# ---------------------------------------------------------------------------
# Pallas kernel: per-mode (lane-wise) channel mixing, real/imag fused.
#   out[b, o, l] = sum_i x[b, i, l] * w[i, o, l]
# x: (B, 2Ci, Ltile)   w: (2Ci, 2Co, Ltile)   out: (B, 2Co, Ltile)   (float32)
# ---------------------------------------------------------------------------
def _spectral_mac_kernel(x_ref, w_ref, o_ref):
    x = x_ref[...]                       # (B, 2Ci, Ltile)
    w = w_ref[...]                       # (2Ci, 2Co, Ltile)
    two_ci = x.shape[1]

    # Unrolled VPU multiply-accumulate over the (small, static) channel axis;
    # every operand is lane-dense along the modes axis.
    acc = x[:, 0:1, :] * w[0:1, :, :]                      # (B, 2Co, Ltile)
    for i in range(1, two_ci):
        acc = acc + x[:, i:i + 1, :] * w[i:i + 1, :, :]
    o_ref[...] = acc


def _pick_lane_tile(L):
    for t in (1024, 512, 256, 128):
        if L % t == 0:
            return t
    return L  # L < 128 (only if padding disabled); single full-width block


def spectral_mac(x_packed, w_packed):
    """x_packed: (B, 2Ci, L) f32; w_packed: (2Ci, 2Co, L) f32 -> (B, 2Co, L) f32.

    L must be a multiple of 128 (the wrapper pads it)."""
    B, two_ci, L = x_packed.shape
    two_co = w_packed.shape[1]
    tl = _pick_lane_tile(L)

    return pl.pallas_call(
        _spectral_mac_kernel,
        out_shape=jax.ShapeDtypeStruct((B, two_co, L), jnp.float32),
        grid_spec=pltpu.PrefetchScalarGridSpec(
            num_scalar_prefetch=0,
            grid=(L // tl,),
            in_specs=[
                pl.BlockSpec((B, two_ci, tl), lambda l: (0, 0, l)),
                pl.BlockSpec((two_ci, two_co, tl), lambda l: (0, 0, l)),
            ],
            out_specs=pl.BlockSpec((B, two_co, tl), lambda l: (0, 0, l)),
        ),
        compiler_params=pltpu.CompilerParams(
            dimension_semantics=("parallel",)),
    )(x_packed, w_packed)


# ---------------------------------------------------------------------------
# FourierLayer forward (FFT / slicing / packing glue; hot path in Pallas).
# ---------------------------------------------------------------------------
def fourier_layer_forward(x, weights1, weights2, modes1, modes2):
    B, Ci, H, W = x.shape
    Co = weights1.shape[1]
    Wf = W // 2 + 1
    M = modes1 * modes2
    L = 2 * M                                # [lo-freq modes | hi-freq modes]
    L_pad = ((L + 127) // 128) * 128         # lane-dense padding
    pad = L_pad - L

    x_ft = jnp.fft.rfft2(x)                                  # (B, Ci, H, Wf) c64

    lo = x_ft[:, :, :modes1, :modes2].reshape(B, Ci, M)
    hi = x_ft[:, :, -modes1:, :modes2].reshape(B, Ci, M)
    xc = jnp.concatenate([lo, hi], axis=-1)                  # (B, Ci, L) complex
    x_packed = jnp.concatenate(
        [xc.real, xc.imag], axis=1).astype(jnp.float32)      # (B, 2Ci, L)

    w1 = weights1.reshape(Ci, Co, M)
    w2 = weights2.reshape(Ci, Co, M)
    wc = jnp.concatenate([w1, w2], axis=-1)                  # (Ci, Co, L) complex
    wr = wc.real.astype(jnp.float32)
    wi = wc.imag.astype(jnp.float32)
    w_packed = jnp.concatenate(
        [jnp.concatenate([wr, wi], axis=1),                  # rows for xr
         jnp.concatenate([-wi, wr], axis=1)],                # rows for xi
        axis=0)                                              # (2Ci, 2Co, L)

    if pad:
        x_packed = jnp.pad(x_packed, ((0, 0), (0, 0), (0, pad)))
        w_packed = jnp.pad(w_packed, ((0, 0), (0, 0), (0, pad)))

    out_packed = spectral_mac(x_packed, w_packed)            # (B, 2Co, L_pad)
    out_packed = out_packed[:, :, :L]                        # drop lane padding

    out_c = jax.lax.complex(out_packed[:, :Co, :],
                            out_packed[:, Co:, :])           # (B, Co, L) c64
    out_lo = out_c[:, :, :M].reshape(B, Co, modes1, modes2)
    out_hi = out_c[:, :, M:].reshape(B, Co, modes1, modes2)

    # NOTE: PyTorch reference allocates out_ft with in_channels (works because
    # in_channels == out_channels in this model); reproduced verbatim.
    out_ft = jnp.zeros((B, Ci, H, Wf), dtype=jnp.complex64)
    out_ft = out_ft.at[:, :, :modes1, :modes2].set(out_lo)
    out_ft = out_ft.at[:, :, -modes1:, :modes2].set(out_hi)

    return jnp.fft.irfft2(out_ft, s=(H, W)).astype(jnp.float32)


# Pure-JAX reference of the full forward (correctness check only).
def fourier_layer_reference(x, weights1, weights2, modes1, modes2):
    B, Ci, H, W = x.shape
    Wf = W // 2 + 1
    x_ft = jnp.fft.rfft2(x)
    out_ft = jnp.zeros((B, Ci, H, Wf), dtype=jnp.complex64)
    out_ft = out_ft.at[:, :, :modes1, :modes2].set(
        jnp.einsum('bixy,ioxy->boxy', x_ft[:, :, :modes1, :modes2], weights1))
    out_ft = out_ft.at[:, :, -modes1:, :modes2].set(
        jnp.einsum('bixy,ioxy->boxy', x_ft[:, :, -modes1:, :modes2], weights2))
    return jnp.fft.irfft2(out_ft, s=(H, W)).astype(jnp.float32)


def kaiming_complex(key, in_channels, out_channels, modes1, modes2):
    # kaiming_normal_(fan_in, relu): gain=sqrt(2), fan_in = size(1)*m1*m2
    shape = (in_channels, out_channels, modes1, modes2)
    fan_in = out_channels * modes1 * modes2
    std = np.sqrt(2.0) / np.sqrt(fan_in)
    kr, ki = jax.random.split(key)
    return (jax.random.normal(kr, shape, dtype=jnp.float32) * std
            + 1j * jax.random.normal(ki, shape, dtype=jnp.float32) * std
            ).astype(jnp.complex64)


if __name__ == "__main__":
    B, C, H, W = 2, 4, 16, 16          # in_channels == out_channels (as in model)
    modes1, modes2 = 6, 6

    key = jax.random.PRNGKey(0)
    kx, kw1, kw2 = jax.random.split(key, 3)
    x = jax.random.normal(kx, (B, C, H, W), dtype=jnp.float32)
    weights1 = kaiming_complex(kw1, C, C, modes1, modes2)
    weights2 = kaiming_complex(kw2, C, C, modes1, modes2)

    out = jax.block_until_ready(
        fourier_layer_forward(x, weights1, weights2, modes1, modes2))
    ref = jax.block_until_ready(
        fourier_layer_reference(x, weights1, weights2, modes1, modes2))

    assert out.shape == (B, C, H, W)
    np.testing.assert_allclose(np.asarray(out), np.asarray(ref),
                               rtol=1e-4, atol=1e-4)
    print("KERNEL_OK")
</pallas_src>

<mosaic_0001>
module attributes {stable_mosaic.version = 11 : i64} {
  func.func @_spectral_mac_kernel(%arg0: i32, %arg1: memref<2x8x128xf32, #tpu.memory_space<vmem>>, %arg2: memref<8x8x128xf32, #tpu.memory_space<vmem>>, %arg3: memref<2x8x128xf32, #tpu.memory_space<vmem>>) attributes {dimension_semantics = [#tpu.dimension_semantics<parallel>], iteration_bounds = array<i64: 1>, scalar_prefetch = 0 : i64, scratch_operands = 0 : i64, tpu.core_type = #tpu.core_type<tc>, window_params = [{transform_indices = @transform_0, window_bounds = array<i64: 2, 8, 128>}, {transform_indices = @transform_1, window_bounds = array<i64: 8, 8, 128>}, {transform_indices = @transform_2, window_bounds = array<i64: 2, 8, 128>}]} {
    %c0 = arith.constant 0 : index
    %c0_0 = arith.constant 0 : index
    %c0_1 = arith.constant 0 : index
    %0 = vector.load %arg1[%c0, %c0_0, %c0_1] : memref<2x8x128xf32, #tpu.memory_space<vmem>>, vector<2x8x128xf32>
    %c0_2 = arith.constant 0 : index
    %c0_3 = arith.constant 0 : index
    %c0_4 = arith.constant 0 : index
    %1 = vector.load %arg2[%c0_2, %c0_3, %c0_4] : memref<8x8x128xf32, #tpu.memory_space<vmem>>, vector<8x8x128xf32>
    %2 = vector.extract_strided_slice %0 {offsets = [0, 0, 0], sizes = [2, 1, 128], strides = [1, 1, 1]} : vector<2x8x128xf32> to vector<2x1x128xf32>
    %3 = vector.extract_strided_slice %1 {offsets = [0, 0, 0], sizes = [1, 8, 128], strides = [1, 1, 1]} : vector<8x8x128xf32> to vector<1x8x128xf32>
    %4 = vector.broadcast %2 : vector<2x1x128xf32> to vector<2x8x128xf32>
    %5 = vector.broadcast %3 : vector<1x8x128xf32> to vector<2x8x128xf32>
    %6 = arith.mulf %4, %5 : vector<2x8x128xf32>
    %7 = vector.extract_strided_slice %0 {offsets = [0, 1, 0], sizes = [2, 1, 128], strides = [1, 1, 1]} : vector<2x8x128xf32> to vector<2x1x128xf32>
    %8 = vector.extract_strided_slice %1 {offsets = [1, 0, 0], sizes = [1, 8, 128], strides = [1, 1, 1]} : vector<8x8x128xf32> to vector<1x8x128xf32>
    %9 = vector.broadcast %7 : vector<2x1x128xf32> to vector<2x8x128xf32>
    %10 = vector.broadcast %8 : vector<1x8x128xf32> to vector<2x8x128xf32>
    %11 = arith.mulf %9, %10 : vector<2x8x128xf32>
    %12 = arith.addf %6, %11 : vector<2x8x128xf32>
    %13 = vector.extract_strided_slice %0 {offsets = [0, 2, 0], sizes = [2, 1, 128], strides = [1, 1, 1]} : vector<2x8x128xf32> to vector<2x1x128xf32>
    %14 = vector.extract_strided_slice %1 {offsets = [2, 0, 0], sizes = [1, 8, 128], strides = [1, 1, 1]} : vector<8x8x128xf32> to vector<1x8x128xf32>
    %15 = vector.broadcast %13 : vector<2x1x128xf32> to vector<2x8x128xf32>
    %16 = vector.broadcast %14 : vector<1x8x128xf32> to vector<2x8x128xf32>
    %17 = arith.mulf %15, %16 : vector<2x8x128xf32>
    %18 = arith.addf %12, %17 : vector<2x8x128xf32>
    %19 = vector.extract_strided_slice %0 {offsets = [0, 3, 0], sizes = [2, 1, 128], strides = [1, 1, 1]} : vector<2x8x128xf32> to vector<2x1x128xf32>
    %20 = vector.extract_strided_slice %1 {offsets = [3, 0, 0], sizes = [1, 8, 128], strides = [1, 1, 1]} : vector<8x8x128xf32> to vector<1x8x128xf32>
    %21 = vector.broadcast %19 : vector<2x1x128xf32> to vector<2x8x128xf32>
    %22 = vector.broadcast %20 : vector<1x8x128xf32> to vector<2x8x128xf32>
    %23 = arith.mulf %21, %22 : vector<2x8x128xf32>
    %24 = arith.addf %18, %23 : vector<2x8x128xf32>
    %25 = vector.extract_strided_slice %0 {offsets = [0, 4, 0], sizes = [2, 1, 128], strides = [1, 1, 1]} : vector<2x8x128xf32> to vector<2x1x128xf32>
    %26 = vector.extract_strided_slice %1 {offsets = [4, 0, 0], sizes = [1, 8, 128], strides = [1, 1, 1]} : vector<8x8x128xf32> to vector<1x8x128xf32>
    %27 = vector.broadcast %25 : vector<2x1x128xf32> to vector<2x8x128xf32>
    %28 = vector.broadcast %26 : vector<1x8x128xf32> to vector<2x8x128xf32>
    %29 = arith.mulf %27, %28 : vector<2x8x128xf32>
    %30 = arith.addf %24, %29 : vector<2x8x128xf32>
    %31 = vector.extract_strided_slice %0 {offsets = [0, 5, 0], sizes = [2, 1, 128], strides = [1, 1, 1]} : vector<2x8x128xf32> to vector<2x1x128xf32>
    %32 = vector.extract_strided_slice %1 {offsets = [5, 0, 0], sizes = [1, 8, 128], strides = [1, 1, 1]} : vector<8x8x128xf32> to vector<1x8x128xf32>
    %33 = vector.broadcast %31 : vector<2x1x128xf32> to vector<2x8x128xf32>
    %34 = vector.broadcast %32 : vector<1x8x128xf32> to vector<2x8x128xf32>
    %35 = arith.mulf %33, %34 : vector<2x8x128xf32>
    %36 = arith.addf %30, %35 : vector<2x8x128xf32>
    %37 = vector.extract_strided_slice %0 {offsets = [0, 6, 0], sizes = [2, 1, 128], strides = [1, 1, 1]} : vector<2x8x128xf32> to vector<2x1x128xf32>
    %38 = vector.extract_strided_slice %1 {offsets = [6, 0, 0], sizes = [1, 8, 128], strides = [1, 1, 1]} : vector<8x8x128xf32> to vector<1x8x128xf32>
    %39 = vector.broadcast %37 : vector<2x1x128xf32> to vector<2x8x128xf32>
    %40 = vector.broadcast %38 : vector<1x8x128xf32> to vector<2x8x128xf32>
    %41 = arith.mulf %39, %40 : vector<2x8x128xf32>
    %42 = arith.addf %36, %41 : vector<2x8x128xf32>
    %43 = vector.extract_strided_slice %0 {offsets = [0, 7, 0], sizes = [2, 1, 128], strides = [1, 1, 1]} : vector<2x8x128xf32> to vector<2x1x128xf32>
    %44 = vector.extract_strided_slice %1 {offsets = [7, 0, 0], sizes = [1, 8, 128], strides = [1, 1, 1]} : vector<8x8x128xf32> to vector<1x8x128xf32>
    %45 = vector.broadcast %43 : vector<2x1x128xf32> to vector<2x8x128xf32>
    %46 = vector.broadcast %44 : vector<1x8x128xf32> to vector<2x8x128xf32>
    %47 = arith.mulf %45, %46 : vector<2x8x128xf32>
    %48 = arith.addf %42, %47 : vector<2x8x128xf32>
    %c0_5 = arith.constant 0 : index
    %c0_6 = arith.constant 0 : index
    %c0_7 = arith.constant 0 : index
    %49 = vector.load %arg3[%c0_5, %c0_6, %c0_7] : memref<2x8x128xf32, #tpu.memory_space<vmem>>, vector<2x8x128xf32>
    tpu.vector_store %arg3[%c0_5, %c0_6, %c0_7], %48 {strides = array<i32>} : memref<2x8x128xf32, #tpu.memory_space<vmem>>, vector<2x8x128xf32>,
    return
  }
  func.func @transform_0(%arg0: i32) -> (i32, i32, i32) {
    %c0_i32 = arith.constant 0 : i32
    %c0_i32_0 = arith.constant 0 : i32
    %c0_i32_1 = arith.constant 0 : i32
    return %c0_i32, %c0_i32_0, %arg0 : i32, i32, i32
  }
  func.func @transform_1(%arg0: i32) -> (i32, i32, i32) {
    %c0_i32 = arith.constant 0 : i32
    %c0_i32_0 = arith.constant 0 : i32
    %c0_i32_1 = arith.constant 0 : i32
    return %c0_i32, %c0_i32_0, %arg0 : i32, i32, i32
  }
  func.func @transform_2(%arg0: i32) -> (i32, i32, i32) {
    %c0_i32 = arith.constant 0 : i32
    %c0_i32_0 = arith.constant 0 : i32
    %c0_i32_1 = arith.constant 0 : i32
    return %c0_i32, %c0_i32_0, %arg0 : i32, i32, i32
  }
}

</mosaic_0001>

<bundles_post_ra>
// kernel: tpu_custom_call.1
= control target key start
LH: loop header
LB: loop body
LE: loop exit
PB: predicated region body
PF: predicated region fallthrough
CT: control target
= control target key end

     0   :  { %7 = vsyncpa [#allocation3], 0  ;;  %s243_s0 = inlined_call_operand.hbm [shape: f32[2,8,128], index: 0, kind: input, shape index: {}]   ;;  %s244_s1 = inlined_call_operand.hbm [shape: f32[8,8,128], index: 1, kind: input, shape index: {}]   ;;  %s245_s2 = inlined_call_operand.hbm [shape: f32[2,8,128], index: 2, kind: output, shape index: {}]  }
   0x1   :  { %8 = vsyncpa [#allocation6], 0 }
   0x2   :  { %9 = vsyncpa [#allocation4], 0  ;;  %s14_s11 = sshll.u32 %s243_s0, 4  ;;  %s205_s12 = smov [#allocation2]   ;;  %s15_s11 = int_to_ptr.hbm [resolvable:$true] %s14_s11 }
   0x3   :  { %s16_s13 = sshll.u32 %s205_s12, 4  ;;  %s27_s16 = sshll.u32 %s244_s1, 4  ;;  %s17_s13 = int_to_ptr.vmem [resolvable:$true] %s16_s13  ;;  %s28_s16 = int_to_ptr.hbm [resolvable:$true] %s27_s16 }
   0x4   :  { %s206_s17 = smov 128   ;;  %s207_s18 = smov 8  }
   0x5   :  { %22 = dma.hbm_to_vmem [thread:$0]  %s15_s11, 256, %s17_s13, [#allocation3], %s206_s17, %s206_s17, %s207_s18  }
   0x6   :  { %s208_s19 = smov [#allocation5]  }
   0x7   :  { %s29_s20 = sshll.u32 %s208_s19, 4  ;;  %s30_s20 = int_to_ptr.vmem [resolvable:$true] %s29_s20 }
   0x8   :  { %35 = dma.hbm_to_vmem [thread:$0]  %s28_s16, 1024, %s30_s20, [#allocation6], %s206_s17, %s206_s17, %s207_s18  }
   0x9   :  { %199 = dma.done.wait [#allocation3], 256  }
   0xa   :  { %200 = vsyncadd [#allocation3], 4294967040 }
   0xb   :  { %201 = dma.done.wait [#allocation6], 1024  }
   0xc   :  { %202 = vsyncadd [#allocation6], 4294966272  ;;  %v44_v0 = vld [vmem:[#allocation2] sm:$0xff]  ;;  %v46_v1 = vld [vmem:[#allocation5] sm:$0xff]  ;;  %s209_s0 = smov [#allocation7]   ;;  %s108_s23 = sshll.u32 %s245_s2, 4  ;;  %s109_s23 = int_to_ptr.hbm [resolvable:$true] %s108_s23 }
   0xd   :  { %v47_v2 = vld [vmem:[#allocation5 + $0x8] sm:$0xff]  ;;  %v48_v3 = vld [vmem:[#allocation5 + $0x10] sm:$0xff]  ;;  %v54_v4 = vperm.slane %v44_v0, 0  ;;  %v58_v5 = vperm.slane %v44_v0, 1  ;;  %v64_v6 = vperm.slane %v44_v0, 2  ;;  %v49_v7 = vld [vmem:[#allocation5 + $0x18] sm:$0xff] }
   0xe   :  { %v70_v8 = vperm.slane %v44_v0, 3  ;;  %v76_v9 = vperm.slane %v44_v0, 4  ;;  %v50_v10 = vld [vmem:[#allocation5 + $0x20] sm:$0xff]  ;;  %v45_v14 = vld [vmem:[#allocation2 + $0x8] sm:$0xff]  ;;  %v82_v15 = vperm.slane %v44_v0, 5  ;;  %v51_v16 = vld [vmem:[#allocation5 + $0x28] sm:$0xff] }
   0xf   :  { %v56_v11 = vmul.f32 %v54_v4, %v46_v1  ;;  %v60_v12 = vmul.f32 %v58_v5, %v47_v2  ;;  %v66_v13 = vmul.f32 %v64_v6, %v48_v3  ;;  %v55_v19 = vperm.slane %v45_v14, 0  ;;  %v52_v25 = vld [vmem:[#allocation5 + $0x30] sm:$0xff]  ;;  %v53_v33 = vld [vmem:[#allocation5 + $0x38] sm:$0xff]  ;;  %s106_s1 = sshll.u32 %s209_s0, 4  ;;  %s107_s1 = int_to_ptr.vmem [resolvable:$true] %s106_s1 }
  0x10   :  { %v72_v18 = vmul.f32 %v70_v8, %v49_v7  ;;  %v59_v20 = vperm.slane %v45_v14, 1  ;;  %v78_v21 = vmul.f32 %v76_v9, %v50_v10  ;;  %v88_v22 = vperm.slane %v44_v0, 6 }
  0x11   :  { %v62_v17 = vadd.f32 %v60_v12, %v56_v11  ;;  %v65_v23 = vperm.slane %v45_v14, 2  ;;  %v71_v24 = vperm.slane %v45_v14, 3  ;;  %v57_v27 = vmul.f32 %v55_v19, %v46_v1 }
  0x12   :  { %v61_v28 = vmul.f32 %v59_v20, %v47_v2  ;;  %v77_v29 = vperm.slane %v45_v14, 4  ;;  %v84_v30 = vmul.f32 %v82_v15, %v51_v16  ;;  %v94_v31 = vperm.slane %v44_v0, 7 }
  0x13   :  { %v68_v26 = vadd.f32 %v66_v13, %v62_v17  ;;  %v67_v32 = vmul.f32 %v65_v23, %v48_v3  ;;  %v73_v36 = vmul.f32 %v71_v24, %v49_v7  ;;  %v83_v37 = vperm.slane %v45_v14, 5 }
  0x14   :  { %v63_v35 = vadd.f32 %v61_v28, %v57_v27  ;;  %v90_v38 = vmul.f32 %v88_v22, %v52_v25  ;;  %v79_v41 = vmul.f32 %v77_v29, %v50_v10  ;;  %v89_v42 = vperm.slane %v45_v14, 6 }
  0x15   :  { %v74_v34 = vadd.f32 %v72_v18, %v68_v26  ;;  %v96_v43 = vmul.f32 %v94_v31, %v53_v33  ;;  %v85_v46 = vmul.f32 %v83_v37, %v51_v16  ;;  %v95_v47 = vperm.slane %v45_v14, 7 }
  0x16   :  { %v69_v40 = vadd.f32 %v67_v32, %v63_v35  ;;  %v91_v50 = vmul.f32 %v89_v42, %v52_v25 }
  0x17   :  { %v80_v39 = vadd.f32 %v78_v21, %v74_v34  ;;  %v97_v53 = vmul.f32 %v95_v47, %v53_v33 }
  0x18   :  { %v75_v45 = vadd.f32 %v73_v36, %v69_v40 }
  0x19   :  { %v86_v44 = vadd.f32 %v84_v30, %v80_v39 }
  0x1a   :  { %v81_v49 = vadd.f32 %v79_v41, %v75_v45 }
  0x1b   :  { %v92_v48 = vadd.f32 %v90_v38, %v86_v44 }
  0x1c   :  { %v87_v52 = vadd.f32 %v85_v46, %v81_v49 }
  0x1d   :  { %v98_v51 = vadd.f32 %v96_v43, %v92_v48 }
  0x1e   :  { %v93_v54 = vadd.f32 %v91_v50, %v87_v52 }
  0x1f   :  { %100 = vst [vmem:[#allocation7] sm:$0xff] %v98_v51 }
  0x20   :  { %v99_v55 = vadd.f32 %v97_v53, %v93_v54 }
  0x22   :  { %101 = vst [vmem:[#allocation7 + $0x8] sm:$0xff] %v99_v55 }
  0x23   :  { %114 = dma.vmem_to_hbm [thread:$0]  %s107_s1, 256, %s109_s23, [#allocation4], %s206_s17, %s206_s17, %s207_s18  }
  0x24   :  { %203 = dma.done.wait [#allocation4], 256  }
  0x25   :  { %204 = vsyncadd [#allocation4], 4294967040 }
  0x26   :  { %119 = vsyncpa [#allocation3], 1 }
  0x27   :  { %120 = vsyncpa [#allocation6], 1 }
  0x28   :  { %121 = vsyncpa [#allocation4], 1 }

</bundles_post_ra>
